<compile_context>
chip_gen: v7x
topology: tpu7x:2x2x1
jax: 0.10.0
libtpu: 0.0.40
codegen_flags: <defaults>
</compile_context>

<pallas_src>
import functools
import warnings

import jax
import jax.numpy as jnp
import numpy as np
from jax.experimental import pallas as pl
from jax.experimental.pallas import tpu as pltpu

warnings.filterwarnings("ignore", message="Some donated buffers were not usable")

_MAX_BC = 512           # hard cap on channel planes per grid step
_TARGET_MIN_STEPS = 4   # aim for >= this many grid steps (megacore + pipelining)
_SEP_MAX_TH = 64        # max output rows per separable grid step (bounds unroll)

# Compute-aware gate for the Kronecker (single-matmul) path: fall back to the
# separable path when the dense Kron matmul would exceed ~2x the HBM roofline
# on the slowest supported generation (v5e: ~197 TF/s bf16 / ~0.82 TB/s HBM;
# f32 matmul runs at a multi-pass fraction of the bf16 rate).
_KRON_MAX_FLOPS_PER_BYTE_F32 = 110.0
_KRON_MAX_FLOPS_PER_BYTE_BF16 = 400.0


def _round_up(n: int, m: int) -> int:
    return ((n + m - 1) // m) * m


def _sublane_pack(dtype) -> int:
    # Rows per packed sublane tile: 8 for f32, 16 for bf16, 32 for int8/fp8.
    return max(8, 32 // np.dtype(dtype).itemsize)


@functools.lru_cache(maxsize=None)
def _vmem_budget_bytes() -> tuple:
    """(vmem_limit_bytes, block_budget_bytes) sized per TPU generation."""
    cap = 64 * 1024 * 1024            # conservative fallback (v7x per-core VMEM)
    try:
        cap = int(pltpu.get_tpu_info().vmem_capacity_bytes)
    except Exception:                 # non-TPU backend / older API: keep fallback
        pass
    limit = (cap * 3) // 4            # ~96 MiB on v5e/v6e, ~48 MiB on v7x
    block_budget = (limit * 2) // 3   # what block sizing targets (headroom left)
    return limit, block_budget


def _bilinear_weights_align_corners(in_size: int, out_size: int) -> np.ndarray:
    """Interpolation matrix W [out_size, in_size]: out = W @ in (align_corners=True)."""
    W = np.zeros((out_size, in_size), dtype=np.float64)
    if out_size == 1 or in_size == 1:
        W[:, 0] = 1.0
        return W
    scale = (in_size - 1) / (out_size - 1)
    for i in range(out_size):
        src = i * scale
        i0 = min(int(np.floor(src)), in_size - 1)
        i1 = min(i0 + 1, in_size - 1)
        w1 = src - i0
        W[i, i0] += 1.0 - w1
        W[i, i1] += w1
    return W


# --------------------------- kernels ---------------------------------------


def _kron_upsample_add_kernel(w_ref, x_ref, y_ref, o_ref):
    # x_ref: (BC, k_in), w_ref: (k_in, tko), y_ref/o_ref: (BC, tko).
    # One lane-dense MXU matmul + VPU add; stores are unmasked full-lane vst
    # whenever tko is a multiple of 128 (always true when the column axis is
    # split) or equals the full output width.
    up = jnp.dot(x_ref[...], w_ref[...], preferred_element_type=jnp.float32)
    o_ref[...] = (up + y_ref[...].astype(jnp.float32)).astype(o_ref.dtype)


def _separable_upsample_add_kernel(wwt_ref, x_ref, y_ref, o_ref, *,
                                   tho: int, h_in: int, h_out: int):
    # wwt_ref: (W_in, W_out); x_ref: (BC, H_in, W_in) (all input rows resident);
    # y_ref/o_ref: (BC, tho, W_out) = output-row tile `j` of the plane.
    #
    # H-interp: 2-tap lerp per output row.  Row indices and the fractional
    # weight are computed on the scalar unit from the global row id; the taps
    # are dynamic sublane slices of x (layout preserved, no cross-tile repack),
    # and the lerp runs on the VPU.  W-interp: one MXU matmul.
    j = pl.program_id(1)
    bc, _, w_in = x_ref.shape
    w_out = wwt_ref.shape[1]
    inv = 1.0 / max(h_out - 1, 1)

    rows = []
    for h in range(tho):                      # static unroll, tho <= _SEP_MAX_TH
        g = j * tho + h                       # global output row (scalar, int32)
        num = g * (h_in - 1)
        i0 = jnp.minimum(num // max(h_out - 1, 1), h_in - 1)
        i1 = jnp.minimum(i0 + 1, h_in - 1)
        a = (num % max(h_out - 1, 1)).astype(jnp.float32) * inv
        r0 = x_ref[:, pl.ds(i0, 1), :].astype(jnp.float32)   # (BC, 1, W_in)
        r1 = x_ref[:, pl.ds(i1, 1), :].astype(jnp.float32)
        rows.append(r0 + a * (r1 - r0))
    t = jnp.concatenate(rows, axis=1)                         # (BC, tho, W_in) f32

    up = jnp.dot(t.reshape(bc * tho, w_in).astype(wwt_ref.dtype), wwt_ref[...],
                 preferred_element_type=jnp.float32).reshape(bc, tho, w_out)
    o_ref[...] = (up + y_ref[...].astype(jnp.float32)).astype(o_ref.dtype)


# --------------------------- wrapper ----------------------------------------


@functools.partial(jax.jit, static_argnames=("scale_factor",),
                   donate_argnames=("y",))
def upsample_add(x: jax.Array, y: jax.Array, *, scale_factor: int) -> jax.Array:
    """Pallas equivalent of UpsampleAdd(scale_factor, 'bilinear', align_corners=True).

    x: [N, C, H, W], y: [N, C, H*scale_factor, W*scale_factor] (NCHW).
    NOTE: y is donated and overwritten in place with the result.
    """
    N, C, H_in, W_in = x.shape
    H_out, W_out = H_in * scale_factor, W_in * scale_factor
    assert y.shape == (N, C, H_out, W_out), (y.shape, (N, C, H_out, W_out))

    if scale_factor == 1:
        # Same short-circuit as the PyTorch module (pure elementwise add).
        return x + y

    NC = N * C
    out_dtype = y.dtype
    # bf16 activations -> bf16 weights (full-rate MXU).  NOTE: PyTorch keeps the
    # bilinear coefficients in f32 even for bf16 tensors, so bf16 outputs can
    # differ by ~1 bf16 ulp.  f32 activations keep exact f32 weights.
    w_dtype = jnp.bfloat16 if x.dtype == jnp.bfloat16 else jnp.float32

    x_bytes = x.dtype.itemsize
    y_bytes = y.dtype.itemsize
    o_bytes = np.dtype(out_dtype).itemsize
    w_bytes = np.dtype(w_dtype).itemsize
    k_in, k_out = H_in * W_in, H_out * W_out
    k_in_pad, k_out_pad = _round_up(k_in, 128), _round_up(k_out, 128)

    vmem_limit, block_budget = _vmem_budget_bytes()
    max_w_resident = block_budget // 3        # weight blocks (double-buffered)
    sub = _sublane_pack(x.dtype)

    wh = _bilinear_weights_align_corners(H_in, H_out)   # (H_out, H_in), float64
    ww = _bilinear_weights_align_corners(W_in, W_out)   # (W_out, W_in), float64

    # ----- path selection: compute-aware (HBM roofline) + VMEM feasibility -----
    hbm_bytes_per_chan = k_in * x_bytes + k_out * (y_bytes + o_bytes)
    max_intensity = (_KRON_MAX_FLOPS_PER_BYTE_BF16 if w_dtype == jnp.bfloat16
                     else _KRON_MAX_FLOPS_PER_BYTE_F32)
    kron_compute_ok = 2.0 * k_in * k_out <= max_intensity * hbm_bytes_per_chan
    kron_fits_vmem = (
        2 * k_in_pad * k_out_pad * w_bytes <= max_w_resident
        or (k_out >= 256 and 2 * k_in_pad * 128 * w_bytes <= max_w_resident))

    if kron_compute_ok and kron_fits_vmem:
        # ---------------- Kronecker (single-matmul) path ----------------
        w_kron_t = jnp.asarray(np.kron(wh, ww).T, dtype=w_dtype)   # (k_in, k_out)

        # Output-column tile: full k_out if the double-buffered weight fits its
        # budget share, else the largest 128-multiple that does (bounds the
        # resident weight without relying on pipeline_mode=Buffered(1)).
        if 2 * k_in_pad * k_out_pad * w_bytes <= max_w_resident:
            tko, n_ko = k_out, 1
        else:
            tko = (max_w_resident // (2 * k_in_pad * w_bytes)) // 128 * 128
            tko = int(max(128, min(tko, k_out_pad)))
            n_ko = pl.cdiv(k_out, tko)

        # Channel block from the remaining budget (double-buffered blocks plus
        # f32 matmul/add temporaries), aligned to the dtype's sublane packing.
        tko_pad = _round_up(tko, 128)
        per_chan = (2 * (k_in_pad * x_bytes + tko_pad * (y_bytes + o_bytes))
                    + 2 * tko_pad * 4)
        w_resident = 2 * k_in_pad * tko_pad * w_bytes
        bc = max(sub, (block_budget - w_resident) // per_chan)
        bc = int(min(bc, NC, _MAX_BC))
        if bc < NC:
            bc = min(NC, max(sub, (bc // sub) * sub))
        nc_blocks = pl.cdiv(NC, bc)

        # Guarantee >= _TARGET_MIN_STEPS grid steps (v7x megacore sharding +
        # DMA/compute overlap) by splitting output columns; channel blocks stay
        # sublane-aligned and every store stays lane-dense (>=128 lanes).
        if nc_blocks * n_ko < _TARGET_MIN_STEPS and k_out >= 256:
            want = min(pl.cdiv(_TARGET_MIN_STEPS, nc_blocks), k_out_pad // 128)
            if want > n_ko:
                tko = int(_round_up(pl.cdiv(k_out, want), 128))
                n_ko = pl.cdiv(k_out, tko)

        grid = (nc_blocks, n_ko)
        x2 = x.reshape(NC, k_in)     # free reshapes: contiguous NCHW memory
        y2 = y.reshape(NC, k_out)

        cost = pl.CostEstimate(
            flops=2 * NC * k_in * k_out + NC * k_out,
            transcendentals=0,
            bytes_accessed=(NC * hbm_bytes_per_chan
                            + k_in * k_out * w_bytes
                            * (nc_blocks if n_ko > 1 else 1)))

        out2 = pl.pallas_call(
            _kron_upsample_add_kernel,
            out_shape=jax.ShapeDtypeStruct((NC, k_out), out_dtype),
            grid_spec=pltpu.PrefetchScalarGridSpec(
                num_scalar_prefetch=0,
                grid=grid,
                in_specs=[
                    # Weight columns: with n_ko == 1 the block index never
                    # changes, so the weight is DMA'd exactly once.
                    pl.BlockSpec((k_in, tko), lambda i, j: (0, j)),
                    # x is invariant along the inner axis -> stays resident.
                    pl.BlockSpec((bc, k_in), lambda i, j: (i, 0)),
                    pl.BlockSpec((bc, tko), lambda i, j: (i, j)),
                ],
                out_specs=pl.BlockSpec((bc, tko), lambda i, j: (i, j)),
            ),
            compiler_params=pltpu.CompilerParams(
                dimension_semantics=("parallel", "parallel"),
                vmem_limit_bytes=vmem_limit),
            cost_estimate=cost,
            input_output_aliases={2: 0},   # write the result in place over y
        )(w_kron_t, x2, y2)
        return out2.reshape(N, C, H_out, W_out)

    # ---------------- Separable fallback (large planes) ----------------
    wwt = jnp.asarray(ww.T, dtype=w_dtype)               # (W_in, W_out)

    h_in_p = _round_up(H_in, 8)
    w_in_p = _round_up(W_in, 128)
    w_out_p = _round_up(W_out, 128)

    def _sep_sizes(tho_):
        per = (2 * h_in_p * w_in_p * x_bytes                    # x plane (2 bufs)
               + 2 * tho_ * w_out_p * (y_bytes + o_bytes)       # y/out blocks
               + tho_ * (w_in_p + w_out_p) * 4)                 # f32 temporaries
        fix = 2 * _round_up(W_in, 8) * w_out_p * w_bytes        # wwt (2 bufs)
        return per, fix

    tho = H_out if H_out <= _SEP_MAX_TH else _SEP_MAX_TH
    per_chan, fixed = _sep_sizes(tho)
    if fixed + per_chan > block_budget and H_out > 8:
        tho = 8
        per_chan, fixed = _sep_sizes(tho)
    if fixed + per_chan > block_budget:
        # TODO(synk): add W_out tiling for planes too large for one channel's
        # blocks to fit in VMEM; not needed for FPN-sized inputs.
        raise NotImplementedError(
            "upsample_add: plane too large for the separable kernel's VMEM budget")

    bc = max(1, (block_budget - fixed) // per_chan)
    bc = int(min(bc, NC, _MAX_BC))
    nc_blocks = pl.cdiv(NC, bc)
    nho_blocks = pl.cdiv(H_out, tho)

    # Keep >= _TARGET_MIN_STEPS steps for megacore sharding / pipelining.
    if nc_blocks * nho_blocks < _TARGET_MIN_STEPS and H_out > 8:
        want = min(pl.cdiv(_TARGET_MIN_STEPS, nc_blocks), pl.cdiv(H_out, 8))
        if want > nho_blocks:
            tho = int(max(8, _round_up(pl.cdiv(H_out, want), 8)))
            nho_blocks = pl.cdiv(H_out, tho)

    grid = (nc_blocks, nho_blocks)
    x3 = x.reshape(NC, H_in, W_in)
    y3 = y.reshape(NC, H_out, W_out)

    kernel = functools.partial(_separable_upsample_add_kernel,
                               tho=tho, h_in=H_in, h_out=H_out)

    cost = pl.CostEstimate(
        flops=NC * (4 * H_out * W_in + 2 * H_out * W_in * W_out + H_out * W_out),
        transcendentals=0,
        bytes_accessed=NC * (H_in * W_in * x_bytes + k_out * (y_bytes + o_bytes)))

    out3 = pl.pallas_call(
        kernel,
        out_shape=jax.ShapeDtypeStruct((NC, H_out, W_out), out_dtype),
        grid_spec=pltpu.PrefetchScalarGridSpec(
            num_scalar_prefetch=0,
            grid=grid,
            in_specs=[
                pl.BlockSpec((W_in, W_out), lambda i, j: (0, 0)),         # wwt
                pl.BlockSpec((bc, H_in, W_in), lambda i, j: (i, 0, 0)),   # x rows
                pl.BlockSpec((bc, tho, W_out), lambda i, j: (i, j, 0)),   # y tile
            ],
            out_specs=pl.BlockSpec((bc, tho, W_out), lambda i, j: (i, j, 0)),
        ),
        compiler_params=pltpu.CompilerParams(
            dimension_semantics=("parallel", "parallel"),
            vmem_limit_bytes=vmem_limit),
        cost_estimate=cost,
        input_output_aliases={2: 0},
    )(wwt, x3, y3)
    return out3.reshape(N, C, H_out, W_out)


# --------------------------- reference & test --------------------------------


def _reference_upsample_add(x: np.ndarray, y: np.ndarray, scale_factor: int) -> np.ndarray:
    """Vectorized numpy bilinear (align_corners=True) upsample + add."""
    if scale_factor == 1:
        return x + y
    N, C, Hi, Wi = x.shape
    Ho, Wo = Hi * scale_factor, Wi * scale_factor
    hs = (Hi - 1) / (Ho - 1) if Ho > 1 else 0.0
    ws = (Wi - 1) / (Wo - 1) if Wo > 1 else 0.0
    sh = np.arange(Ho) * hs
    h0 = np.minimum(np.floor(sh).astype(np.int64), Hi - 1)
    h1 = np.minimum(h0 + 1, Hi - 1)
    ah = (sh - h0)[None, None, :, None]
    sw = np.arange(Wo) * ws
    w0 = np.minimum(np.floor(sw).astype(np.int64), Wi - 1)
    w1 = np.minimum(w0 + 1, Wi - 1)
    aw = (sw - w0)[None, None, None, :]
    x00 = x[:, :, h0][:, :, :, w0]
    x01 = x[:, :, h0][:, :, :, w1]
    x10 = x[:, :, h1][:, :, :, w0]
    x11 = x[:, :, h1][:, :, :, w1]
    up = ((1 - ah) * (1 - aw) * x00 + (1 - ah) * aw * x01
          + ah * (1 - aw) * x10 + ah * aw * x11)
    return up + y


if __name__ == "__main__":
    key = jax.random.PRNGKey(0)
    kx, ky, kx2, ky2, kz, kw = jax.random.split(key, 6)
    s = 2

    # --- Small planes: Kronecker (single-matmul, lane-dense) kernel path. ---
    N, C, H, W = 2, 4, 16, 16
    x = jax.random.normal(kx, (N, C, H, W), dtype=jnp.float32)
    y = jax.random.normal(ky, (N, C, H * s, W * s), dtype=jnp.float32)
    # Take numpy copies BEFORE the call: y is donated (consumed in place).
    x_np, y_np = np.asarray(x, np.float64), np.asarray(y, np.float64)
    out = jax.block_until_ready(upsample_add(x, y, scale_factor=s))
    ref = _reference_upsample_add(x_np, y_np, s)
    np.testing.assert_allclose(np.asarray(out), ref, rtol=1e-5, atol=1e-5)

    # --- Larger planes: separable fallback kernel path. ---
    N2, C2, H2, W2 = 1, 3, 48, 48
    x2 = jax.random.normal(kx2, (N2, C2, H2, W2), dtype=jnp.float32)
    y2 = jax.random.normal(ky2, (N2, C2, H2 * s, W2 * s), dtype=jnp.float32)
    x2_np, y2_np = np.asarray(x2, np.float64), np.asarray(y2, np.float64)
    out2 = jax.block_until_ready(upsample_add(x2, y2, scale_factor=s))
    ref2 = _reference_upsample_add(x2_np, y2_np, s)
    np.testing.assert_allclose(np.asarray(out2), ref2, rtol=1e-5, atol=1e-5)

    # --- scale_factor == 1 short-circuit (pure add), as in the PyTorch module. ---
    a1 = jax.random.normal(kz, (N, C, H, W), dtype=jnp.float32)
    b1 = jax.random.normal(kw, (N, C, H, W), dtype=jnp.float32)
    a1_np, b1_np = np.asarray(a1), np.asarray(b1)
    out1 = jax.block_until_ready(upsample_add(a1, b1, scale_factor=1))
    np.testing.assert_allclose(np.asarray(out1), a1_np + b1_np, rtol=1e-6, atol=1e-6)

    print("KERNEL_OK")
</pallas_src>

<mosaic_0001>
module attributes {stable_mosaic.version = 11 : i64} {
  func.func @_kron_upsample_add_kernel(%arg0: i32, %arg1: i32, %arg2: memref<256x256xf32, #tpu.memory_space<vmem>>, %arg3: memref<8x256xf32, #tpu.memory_space<vmem>>, %arg4: memref<8x256xf32, #tpu.memory_space<vmem>>, %arg5: memref<8x256xf32, #tpu.memory_space<vmem>>) attributes {dimension_semantics = [#tpu.dimension_semantics<parallel>, #tpu.dimension_semantics<parallel>], iteration_bounds = array<i64: 1, 4>, scalar_prefetch = 0 : i64, scratch_operands = 0 : i64, tpu.core_type = #tpu.core_type<tc>, window_params = [{transform_indices = @transform_0, window_bounds = array<i64: 256, 256>}, {transform_indices = @transform_1, window_bounds = array<i64: 8, 256>}, {transform_indices = @transform_2, window_bounds = array<i64: 8, 256>}, {transform_indices = @transform_3, window_bounds = array<i64: 8, 256>}]} {
    %c0 = arith.constant 0 : index
    %c0_0 = arith.constant 0 : index
    %0 = vector.load %arg3[%c0, %c0_0] : memref<8x256xf32, #tpu.memory_space<vmem>>, vector<8x256xf32>
    %c0_1 = arith.constant 0 : index
    %c0_2 = arith.constant 0 : index
    %1 = vector.load %arg2[%c0_1, %c0_2] : memref<256x256xf32, #tpu.memory_space<vmem>>, vector<256x256xf32>
    %cst = arith.constant dense<0.000000e+00> : vector<8x256xf32>
    %2 = tpu.matmul %0, %1, %cst {dimension_numbers = #tpu.dot_dimension_numbers<[1], [0], [0], [1], [0, 0, 1, 1], [], []>} : vector<8x256xf32>, vector<256x256xf32>, vector<8x256xf32> -> vector<8x256xf32>
    %c0_3 = arith.constant 0 : index
    %c0_4 = arith.constant 0 : index
    %3 = vector.load %arg4[%c0_3, %c0_4] : memref<8x256xf32, #tpu.memory_space<vmem>>, vector<8x256xf32>
    %4 = arith.addf %2, %3 : vector<8x256xf32>
    %c0_5 = arith.constant 0 : index
    %c0_6 = arith.constant 0 : index
    %5 = vector.load %arg5[%c0_5, %c0_6] : memref<8x256xf32, #tpu.memory_space<vmem>>, vector<8x256xf32>
    tpu.vector_store %arg5[%c0_5, %c0_6], %4 {strides = array<i32>} : memref<8x256xf32, #tpu.memory_space<vmem>>, vector<8x256xf32>,
    return
  }
  func.func @transform_0(%arg0: i32, %arg1: i32) -> (i32, i32) {
    %c0_i32 = arith.constant 0 : i32
    %c0_i32_0 = arith.constant 0 : i32
    return %c0_i32, %arg1 : i32, i32
  }
  func.func @transform_1(%arg0: i32, %arg1: i32) -> (i32, i32) {
    %c0_i32 = arith.constant 0 : i32
    %c0_i32_0 = arith.constant 0 : i32
    return %arg0, %c0_i32 : i32, i32
  }
  func.func @transform_2(%arg0: i32, %arg1: i32) -> (i32, i32) {
    %c0_i32 = arith.constant 0 : i32
    return %arg0, %arg1 : i32, i32
  }
  func.func @transform_3(%arg0: i32, %arg1: i32) -> (i32, i32) {
    %c0_i32 = arith.constant 0 : i32
    return %arg0, %arg1 : i32, i32
  }
}

</mosaic_0001>

<bundles_post_ra>
// kernel: upsample_add.1
= control target key start
LH: loop header
LB: loop body
LE: loop exit
PB: predicated region body
PF: predicated region fallthrough
CT: control target
= control target key end

     0   :  { %8 = vsyncpa [#allocation3], 0  ;;  %s982_s0 = inlined_call_operand.hbm [shape: f32[256,1024], index: 0, kind: input, shape index: {}]   ;;  %s983_s1 = inlined_call_operand.vmem [shape: f32[8,256], index: 1, kind: input, shape index: {}]   ;;  %s984_s2 = inlined_call_operand.vmem [shape: f32[8,1024], index: 2, kind: input, shape index: {}, may-alias: {2,3}]   ;;  %s985_s3 = inlined_call_operand.vmem [shape: f32[8,1024], index: 3, kind: output, shape index: {}, may-alias: {2,3}]  }
   0x1   :  { %10 = vsyncpa [#allocation3 + $0x1], 0  ;;  %s782_s12 = smov 0   ;;  %s784_s13 = smov 0  }
   0x2   :  { %s786_s14 = smov 0   ;;  %s788_s15 = smov 0  }
   0x3   :  { %s790_s16 = smov 0   ;;  %s792_s17 = smov 0  }
   0x4 LB: > { %s537_s18 = sadd.s32 4294967295, %s756_s17   ;;  %s25_s19 = sadd.s32 1, %s752_s16  ;;  %s756_s17 = sphi %s792_s17, %s16_s17   ;;  %s752_s16 = sphi %s790_s16, %s994_s16   ;;  %s748_s15 = sphi %s788_s15, %s993_s15   ;;  %s744_s14 = sphi %s786_s14, %s992_s14   ;;  %s740_s13 = sphi %s784_s13, %s991_s13   ;;  %s736_s12 = sphi %s782_s12, %s990_s12  }
   0x5   : > { %p26_p0 = scmp.ge.s32.totalorder %s25_s19, 4  ;;  %s35_s20 = sadd.s32 1, %s744_s14 }
   0x6   : > { %p42_p1 = scmp.ne.s32.totalorder %s744_s14, %s740_s13  ;;  %p43_p2 = scmp.eq.s32.totalorder %s756_s17, 0 }
   0x7   : > { %s996_s19 = smov (%p26_p0, %s25_s19), 0  ;;  %p48_p4 = scmp.ne.s32.totalorder %s740_s13, %s736_s12 }
   0x8   : > { %p818_p3 = por %p43_p2, %p42_p1  ;;  %s32_s22 = ssub.s32 %s752_s16, %s996_s19 }
   0x9   : > { %p49_p5 = scmp.eq.s32.totalorder %s537_s18, 0  ;;  %p33_p6 = scmp.eq.s32.totalorder %s32_s22, 0 }
   0xa   : > { %p624_p8 = scmp.lt.s32.totalorder %s756_s17, 4  ;;  %s162_s25 = sand.u32 1, %s744_s14  }
   0xb   : > { %p825_p7 = por %p49_p5, %p48_p4  ;;  %s553_s26 = sshll.u32 %s752_s16, 8 }
   0xc   : > { %s831_s24 = scalar_select %p33_p6, %s744_s14, %s35_s20  }
   0xd   : > { %s542_s27 = sshll.u32 %s162_s25, 9  ;;  %s838_s30 = scalar_lea.hbm %s982_s0, %s553_s26 }
   0xe   : > { %s166_s4 = scalar_lea.vmem [#allocation2], %s542_s27  ;;  %p842_p9 = pnand %p624_p8, %p818_p3 }
   0xf   : > { %s173_s5 = sshll.u32 %s166_s4, 4  ;;  %s849_s7 = scalar_lea.sflag [#allocation3], %s162_s25  ;;  %s846_s5 = int_to_ptr.vmem [resolvable:$true] %s173_s5 }
  0x10   : > { %s676_s8 = scalar_lea.hbm %s838_s30, 8192  ;;  %p678_p12 = pneg %p842_p9 }
  0x11   : > { %p677_p11 = scmp.ne.s32.totalorder %s838_s30, %s676_s8  ;;  %s681_s11 = scalar_lea.hbm %s982_s0, 32768 }
  0x12   : > { %p682_p1 = scmp.lt.u32.totalorder %s838_s30, %s982_s0  ;;  %p683_p2 = scmp.lt.u32.totalorder %s681_s11, %s676_s8 }
  0x13   : > { %p679_p13 = pnand %p678_p12, %p677_p11  ;;  %p685_p4 = scmp.lt.u32.totalorder %s676_s8, %s838_s30 }
  0x14   : > { %p684_p3 = por %p683_p2, %p682_p1 }
  0x15   : > { %p680_p0 = pneg %p679_p13 }
  0x16   : > { %p686_p5 = por %p685_p4, %p684_p3 }
  0x18   : > { %p687_p6 = pnand %p686_p5, %p680_p0 }
  0x1a   : > { %690 = shalt.err (!%p687_p6)
}
  0x1b   : > { %s691_s20 = scalar_lea.vmem %s846_s5, 8192  ;;  %s758_s21 = smov [#allocation2]  }
  0x1c   : > { %p692_p8 = scmp.ne.s32.totalorder %s846_s5, %s691_s20  ;;  %s696_s22 = sshll.u32 %s758_s21, 4  ;;  %s697_s22 = int_to_ptr.vmem [resolvable:$false] %s696_s22 }
  0x1d   : > { %s698_s25 = scalar_lea.vmem %s697_s22, 16384  ;;  %p699_p10 = scmp.lt.s32.totalorder %s846_s5, %s697_s22 }
  0x1e   : > { %p694_p11 = pnand %p692_p8, %p678_p12  ;;  %p700_p1 = scmp.lt.s32.totalorder %s698_s25, %s691_s20 }
  0x20   : > { %p695_p13 = pneg %p694_p11  ;;  %p701_p2 = por %p700_p1, %p699_p10 }
  0x22   : > { %p702_p3 = pnand %p701_p2, %p695_p13 }
  0x24   : > { %705 = shalt.err (!%p702_p3)
}
  0x25   : > { %s759_s26 = smov 1024   ;;  %s760_s27 = smov 256  }
  0x26   : > { %s761_s28 = smov 16   ;;  %p194_p12 = scmp.lt.s32.totalorder %s756_s17, 5 }
  0x27   : > { %623 = dma.hbm_to_vmem [thread:$0]  (!%p842_p9), %s838_s30, 8192, %s846_s5, %s849_s7, %s759_s26, %s760_s27, %s761_s28  }
  0x28   : > { %p989_p0 = scmp.ge.s32.totalorder %s756_s17, 1 }
  0x2a   : > { %p195_p4 = pnand %p989_p0, %p194_p12 }
  0x2b   : > { %s200_s29 = sand.u32 (!%p195_p4), 1, %s740_s13  }
  0x2c   : > { %198 = sbr.rel (%p195_p4) target bundleno = 335 (0x14f), region = 32  ;;  %s546_s4 = sshll.u32 (!%p195_p4), %s200_s29, 9 }
  0x2d   : > { %s201_s8 = scalar_lea.sflag (!%p195_p4), [#allocation3], %s200_s29  ;;  %s881_s9 = scalar_lea.vmem (!%p195_p4), [#allocation2], %s546_s4 }
  0x33   : > { %731 = dma.done.wait (%p825_p7), %s201_s8, 8192  }
  0x34   : > { %733 = vsyncadd (%p825_p7), %s201_s8, 4294959104  ;;  %v274_v0 = vld [vmem:[%s881_s9 + $0x8] sm:$0xff]  ;;  %v276_v1 = vld [vmem:[%s881_s9 + $0x18] sm:$0xff]  ;;  %s547_s7 = sshll.u32 %s748_s15, 1 }
  0x35   : > { %v273_v2 = vld [vmem:[%s881_s9] sm:$0xff]  ;;  %v554_v3 = vpack.c.bf16 %v276_v1, %v274_v0  ;;  %v275_v4 = vld [vmem:[%s881_s9 + $0x10] sm:$0xff]  ;;  %v278_v5 = vld [vmem:[%s881_s9 + $0x28] sm:$0xff]  ;;  %p254_p7 = scmp.lt.s32.totalorder %s547_s7, 7 }
  0x36   : > { %v280_v6 = vld [vmem:[%s881_s9 + $0x38] sm:$0xff]  ;;  %v556_v7 = vpack.c.bf16 %v275_v4, %v273_v2  ;;  %v277_v9 = vld [vmem:[%s881_s9 + $0x20] sm:$0xff]  ;;  %v279_v10 = vld [vmem:[%s881_s9 + $0x30] sm:$0xff] }
  0x37   : > { %v558_v8 = vpack.c.bf16 %v280_v6, %v278_v5  ;;  %v282_v11 = vld [vmem:[%s881_s9 + $0x48] sm:$0xff]  ;;  %555 = vmatprep.subr.bf16.mxu0 %v554_v3  ;;  %v284_v12 = vld [vmem:[%s881_s9 + $0x58] sm:$0xff]  ;;  %v560_v13 = vpack.c.bf16 %v279_v10, %v277_v9  ;;  %v281_v15 = vld [vmem:[%s881_s9 + $0x40] sm:$0xff]  ;;  %s998_s7 = smov (!%p254_p7, %s547_s7), 7 }
  0x38   : > { %557 = vmatpush1.bf16.msra.mxu0 %v556_v7  ;;  %v562_v14 = vpack.c.bf16 %v284_v12, %v282_v11  ;;  %v283_v16 = vld [vmem:[%s881_s9 + $0x50] sm:$0xff]  ;;  %v286_v17 = vld [vmem:[%s881_s9 + $0x68] sm:$0xff]  ;;  %v288_v18 = vld [vmem:[%s881_s9 + $0x78] sm:$0xff]  ;;  %s548_s10 = sshll.u32 %s998_s7, 3 }
  0x39   : > { %559 = vmatprep.subr.bf16.mxu0 %v558_v8  ;;  %v564_v19 = vpack.c.bf16 %v283_v16, %v281_v15  ;;  %v566_v20 = vpack.c.bf16 %v288_v18, %v286_v17  ;;  %v285_v21 = vld [vmem:[%s881_s9 + $0x60] sm:$0xff]  ;;  %v287_v22 = vld [vmem:[%s881_s9 + $0x70] sm:$0xff]  ;;  %v290_v23 = vld [vmem:[%s881_s9 + $0x88] sm:$0xff]  ;;  %s259_s18 = scalar_lea.vmem %s984_s2, %s548_s10  ;;  %s269_s22 = scalar_lea.vmem %s985_s3, %s548_s10 }
  0x3a   : > { %v292_v24 = vld [vmem:[%s881_s9 + $0x98] sm:$0xff]  ;;  %v568_v25 = vpack.c.bf16 %v287_v22, %v285_v21  ;;  %v289_v27 = vld [vmem:[%s881_s9 + $0x80] sm:$0xff]  ;;  %v291_v28 = vld [vmem:[%s881_s9 + $0x90] sm:$0xff] }
  0x3b   : > { %v570_v26 = vpack.c.bf16 %v292_v24, %v290_v23  ;;  %v294_v29 = vld [vmem:[%s881_s9 + $0xa8] sm:$0xff]  ;;  %v296_v30 = vld [vmem:[%s881_s9 + $0xb8] sm:$0xff]  ;;  %v572_v31 = vpack.c.bf16 %v291_v28, %v289_v27  ;;  %v293_v33 = vld [vmem:[%s881_s9 + $0xa0] sm:$0xff] }
  0x3c   : > { %561 = vmatpush1.bf16.msra.mxu0 %v560_v13  ;;  %v574_v32 = vpack.c.bf16 %v296_v30, %v294_v29  ;;  %v295_v34 = vld [vmem:[%s881_s9 + $0xb0] sm:$0xff]  ;;  %v298_v35 = vld [vmem:[%s881_s9 + $0xc8] sm:$0xff]  ;;  %v300_v36 = vld [vmem:[%s881_s9 + $0xd8] sm:$0xff] }
  0x3d   : > { %563 = vmatprep.subr.bf16.mxu0 %v562_v14  ;;  %v576_v37 = vpack.c.bf16 %v295_v34, %v293_v33  ;;  %v578_v38 = vpack.c.bf16 %v300_v36, %v298_v35  ;;  %v297_v39 = vld [vmem:[%s881_s9 + $0xc0] sm:$0xff]  ;;  %v299_v40 = vld [vmem:[%s881_s9 + $0xd0] sm:$0xff]  ;;  %v272_v41 = vld [vmem:[%s983_s1 + $0x8] sm:$0xff] }
  0x3e   : > { %v302_v42 = vld [vmem:[%s881_s9 + $0xe8] sm:$0xff]  ;;  %v304_v43 = vld [vmem:[%s881_s9 + $0xf8] sm:$0xff]  ;;  %403 = vmatprep.mubr.f32.mxu0 %v272_v41  ;;  %v580_v44 = vpack.c.bf16 %v299_v40, %v297_v39  ;;  %v301_v46 = vld [vmem:[%s881_s9 + $0xe0] sm:$0xff] }
  0x3f   : > { %v582_v45 = vpack.c.bf16 %v304_v43, %v302_v42  ;;  %v303_v47 = vld [vmem:[%s881_s9 + $0xf0] sm:$0xff]  ;;  %v306_v48 = vld [vmem:[%s881_s9 + $0x108] sm:$0xff]  ;;  %v308_v49 = vld [vmem:[%s881_s9 + $0x118] sm:$0xff] }
  0x40   : > { %565 = vmatpush1.bf16.msra.mxu0 %v564_v19  ;;  %v584_v50 = vpack.c.bf16 %v303_v47, %v301_v46  ;;  %v586_v51 = vpack.c.bf16 %v308_v49, %v306_v48  ;;  %v305_v52 = vld [vmem:[%s881_s9 + $0x100] sm:$0xff]  ;;  %v307_v53 = vld [vmem:[%s881_s9 + $0x110] sm:$0xff]  ;;  %v310_v54 = vld [vmem:[%s881_s9 + $0x128] sm:$0xff] }
  0x41   : > { %567 = vmatprep.subr.bf16.mxu0 %v566_v20  ;;  %v312_v55 = vld [vmem:[%s881_s9 + $0x138] sm:$0xff]  ;;  %v588_v56 = vpack.c.bf16 %v307_v53, %v305_v52  ;;  %v309_v58 = vld [vmem:[%s881_s9 + $0x120] sm:$0xff]  ;;  %v311_v59 = vld [vmem:[%s881_s9 + $0x130] sm:$0xff] }
  0x42   : > { %v590_v57 = vpack.c.bf16 %v312_v55, %v310_v54  ;;  %v314_v60 = vld [vmem:[%s881_s9 + $0x148] sm:$0xff]  ;;  %v316_v61 = vld [vmem:[%s881_s9 + $0x158] sm:$0xff]  ;;  %v592_v62 = vpack.c.bf16 %v311_v59, %v309_v58  ;;  %v313_v0 = vld [vmem:[%s881_s9 + $0x140] sm:$0xff] }
  0x43   : > { %v594_v63 = vpack.c.bf16 %v316_v61, %v314_v60  ;;  %v315_v1 = vld [vmem:[%s881_s9 + $0x150] sm:$0xff]  ;;  %v318_v2 = vld [vmem:[%s881_s9 + $0x168] sm:$0xff]  ;;  %v320_v3 = vld [vmem:[%s881_s9 + $0x178] sm:$0xff] }
  0x44   : > { %569 = vmatpush1.bf16.msra.mxu0 %v568_v25  ;;  %v596_v4 = vpack.c.bf16 %v315_v1, %v313_v0  ;;  %v598_v5 = vpack.c.bf16 %v320_v3, %v318_v2  ;;  %v317_v6 = vld [vmem:[%s881_s9 + $0x160] sm:$0xff]  ;;  %v319_v7 = vld [vmem:[%s881_s9 + $0x170] sm:$0xff]  ;;  %v322_v8 = vld [vmem:[%s881_s9 + $0x188] sm:$0xff] }
  0x45   : > { %571 = vmatprep.subr.bf16.mxu0 %v570_v26  ;;  %v324_v9 = vld [vmem:[%s881_s9 + $0x198] sm:$0xff]  ;;  %v600_v10 = vpack.c.bf16 %v319_v7, %v317_v6  ;;  %v321_v12 = vld [vmem:[%s881_s9 + $0x180] sm:$0xff]  ;;  %v323_v13 = vld [vmem:[%s881_s9 + $0x190] sm:$0xff] }
  0x46   : > { %v602_v11 = vpack.c.bf16 %v324_v9, %v322_v8  ;;  %v326_v14 = vld [vmem:[%s881_s9 + $0x1a8] sm:$0xff]  ;;  %v328_v15 = vld [vmem:[%s881_s9 + $0x1b8] sm:$0xff]  ;;  %v604_v16 = vpack.c.bf16 %v323_v13, %v321_v12  ;;  %v325_v18 = vld [vmem:[%s881_s9 + $0x1a0] sm:$0xff] }
  0x47   : > { %v606_v17 = vpack.c.bf16 %v328_v15, %v326_v14  ;;  %v327_v19 = vld [vmem:[%s881_s9 + $0x1b0] sm:$0xff]  ;;  %v330_v20 = vld [vmem:[%s881_s9 + $0x1c8] sm:$0xff]  ;;  %v332_v21 = vld [vmem:[%s881_s9 + $0x1d8] sm:$0xff] }
  0x48   : > { %573 = vmatpush1.bf16.msra.mxu0 %v572_v31  ;;  %v608_v22 = vpack.c.bf16 %v327_v19, %v325_v18  ;;  %v610_v23 = vpack.c.bf16 %v332_v21, %v330_v20  ;;  %v329_v24 = vld [vmem:[%s881_s9 + $0x1c0] sm:$0xff]  ;;  %v331_v25 = vld [vmem:[%s881_s9 + $0x1d0] sm:$0xff]  ;;  %v334_v26 = vld [vmem:[%s881_s9 + $0x1e8] sm:$0xff] }
  0x49   : > { %575 = vmatprep.subr.bf16.mxu0 %v574_v32  ;;  %v336_v27 = vld [vmem:[%s881_s9 + $0x1f8] sm:$0xff]  ;;  %v612_v28 = vpack.c.bf16 %v331_v25, %v329_v24  ;;  %v333_v30 = vld [vmem:[%s881_s9 + $0x1e0] sm:$0xff]  ;;  %v335_v31 = vld [vmem:[%s881_s9 + $0x1f0] sm:$0xff] }
  0x4a   : > { %v614_v29 = vpack.c.bf16 %v336_v27, %v334_v26  ;;  %v616_v32 = vpack.c.bf16 %v335_v31, %v333_v30  ;;  %v271_v33 = vld [vmem:[%s983_s1] sm:$0xff]  ;;  %v338_v35 = vld [vmem:[%s259_s18 + $0x8] sm:$0xff] }
  0x4b   : > { %v337_v34 = vld [vmem:[%s259_s18] sm:$0xff] }
  0x4c   : > { %577 = vmatpush1.bf16.msra.mxu0 %v576_v37 }
  0x4d   : > { %579 = vmatprep.subr.bf16.mxu0 %v578_v38 }
  0x50   : > { %581 = vmatpush1.bf16.msra.mxu0 %v580_v44 }
  0x51   : > { %583 = vmatprep.subr.bf16.mxu0 %v582_v45 }
  0x54   : > { %585 = vmatpush1.bf16.msra.mxu0 %v584_v50 }
  0x55   : > { %587 = vmatprep.subr.bf16.mxu0 %v586_v51 }
  0x58   : > { %589 = vmatpush1.bf16.msra.mxu0 %v588_v56 }
  0x59   : > { %591 = vmatprep.subr.bf16.mxu0 %v590_v57 }
  0x5c   : > { %593 = vmatpush1.bf16.msra.mxu0 %v592_v62 }
  0x5d   : > { %595 = vmatprep.subr.bf16.mxu0 %v594_v63 }
  0x60   : > { %597 = vmatpush1.bf16.msra.mxu0 %v596_v4 }
  0x61   : > { %599 = vmatprep.subr.bf16.mxu0 %v598_v5 }
  0x64   : > { %601 = vmatpush1.bf16.msra.mxu0 %v600_v10 }
  0x65   : > { %603 = vmatprep.subr.bf16.mxu0 %v602_v11 }
  0x68   : > { %605 = vmatpush1.bf16.msra.mxu0 %v604_v16 }
  0x69   : > { %607 = vmatprep.subr.bf16.mxu0 %v606_v17 }
  0x6c   : > { %609 = vmatpush1.bf16.msra.mxu0 %v608_v22 }
  0x6d   : > { %611 = vmatprep.subr.bf16.mxu0 %v610_v23 }
  0x70   : > { %613 = vmatpush1.bf16.msra.mxu0 %v612_v28 }
  0x71   : > { %615 = vmatprep.subr.bf16.mxu0 %v614_v29 }
  0x74   : > { %617 = vmatpush1.bf16.msra.mxu0 %v616_v32 }
  0x77   : > { %404 = vmatmul.mubr.f32.vlgmr.msra.gmra.mrb[0].mxu0 %v271_v33 }
 0x14a   : > { %v405_v36 = vpop.f32.mrb[0].mxu0 }
 0x14b   : > { %v406_v37 = vadd.f32 %v405_v36, %v337_v34  ;;  %v407_v38 = vpop.f32.mrb[1].mxu0 }
 0x14c   : > { %v408_v39 = vadd.f32 %v407_v38, %v338_v35 }
 0x14d   : > { %410 = vst [vmem:[%s269_s22] sm:$0xff] %v406_v37 }
 0x14e   : > { %411 = vst [vmem:[%s269_s22 + $0x8] sm:$0xff] %v408_v39 }
 0x14f PF: > { %s16_s17 = sadd.s32 1, %s756_s17   ;;  %s990_s12 = smov %s740_s13 }
 0x150   : > { %p13_p9 = scmp.ge.s32.totalorder %s16_s17, 6   ;;  %s991_s13 = smov %s744_s14 }
 0x151   : > { %s992_s14 = smov %s831_s24  ;;  %s993_s15 = smov %s752_s16 }
 0x152   : > { %s994_s16 = smov %s996_s19  ;;  %15 = sbr.rel (!%p13_p9) target bundleno = 4 (0x4), region = 78 }
 0x159   :  { %442 = vsyncpa [#allocation3], 1 }
 0x15a   :  { %444 = vsyncpa [#allocation3 + $0x1], 1 }

</bundles_post_ra>
